<compile_context>
chip_gen: v7x
topology: tpu7x:2x2x1
jax: 0.10.0
libtpu: 0.0.40
codegen_flags: <defaults>
</compile_context>

<pallas_src>
import functools

import jax
import jax.numpy as jnp
from jax.experimental import pallas as pl
from jax.experimental.pallas import tpu as pltpu

# Module hyper-parameters (share_mode '6-3', bw=2 residual levels).
N = 6                       # ensemble members (required by hard-coded gate split)
S = 6 + 3                   # sum(layer_wise_nbits) for '6-3'
GATE_SPLIT = 6              # hard-coded split in the torch forward
TEMPERATURE = 1.0
ZP1 = 1.2
ZP2 = -0.2
RES_DENO_0 = float(2 ** 2 - 1)   # 3
RES_DENO_1 = float(2 ** 2 + 1)   # 5


def _tile_matmul_kernel(x_ref, w_ref, o_ref):
    """One MXU matmul per grid step: bf16 operands, f32 accumulate/store.

    x_ref: (TB, K)  batch tile (K = N*D1 for block-diag path, D1 for per-member)
    w_ref: (K, L)   bf16 weight block (constant across batch tiles)
    o_ref: (TB, L)  f32 output tile
    """
    o_ref[...] = jnp.dot(x_ref[...].astype(jnp.bfloat16), w_ref[...],
                         preferred_element_type=jnp.float32)


def _build_ensemble_weights(U, binary_parameters, noise_g):
    """Gated residual-bit weight construction (plain jnp; runs once, lane-dense).

    Returns w (N, D) float32 = sum over residual levels of vals * gates * order.
    """
    beta = jnp.max(U)
    alpha = jnp.min(U)

    # Stochastic hard-concrete style gates: sigmoid((g + theta)/T), stretched
    # and clipped to [0, 1].
    bsamples = jax.nn.sigmoid((noise_g + binary_parameters) / TEMPERATURE)
    gates = jnp.minimum(1.0, jnp.maximum(0.0, bsamples * (ZP1 - ZP2) + ZP2))
    g0 = gates[:GATE_SPLIT]                          # (6, D) level-0 gates
    g1 = jnp.repeat(gates[GATE_SPLIT:], 2, axis=0)   # (6, D) level-1, shared per member pair
    o0 = (g0 > 0.0).astype(jnp.float32)              # cumprod(gates > 0) over levels
    o1 = o0 * (g1 > 0.0).astype(jnp.float32)

    # Residual quantization, maxBWPow == 2 levels.
    # TODO(synk): torch's custom round only changes the backward (STE); forward is plain round.
    # TODO(synk): s0 == 0 (constant U) would produce NaN/Inf; inherited from the torch code.
    s0 = (beta - alpha) / RES_DENO_0
    v0 = s0 * jnp.round(U / s0)
    s1 = s0 / RES_DENO_1
    pair_mean = 0.5 * (v0[0::2] + v0[1::2])          # (3, D) mean over member pairs
    v1 = s1 * jnp.round((U - jnp.repeat(pair_mean, 2, axis=0)) / s1)

    return v0 * g0 * o0 + v1 * g1 * o1               # (6, D)


def _choose_batch_tile(B, max_tile=1024):
    """>= 2 grid steps once B is big enough (v7x 2-TC sharding), tile capped at
    max_tile rows (HBM-roofline sweet spot), sublane (8) aligned."""
    if B < 64:
        return B                       # single full-extent tile (block == array)
    half = -(-B // 2)                  # ceil(B / 2)
    half = -(-half // 8) * 8           # round up to a sublane multiple
    return min(max_tile, half)


@functools.partial(jax.jit, static_argnames=("strategy",))
def dense_shared_res_bit_baens_fwd(x, U, binary_parameters, noise_g, strategy=None):
    """Forward pass.

    x: (B, N, D1) float32, U: (N, D), binary_parameters/noise_g: (S, D),
    with D = D1*D2.  Returns act: (B, N, D2) float32.
    """
    B, n, d1 = x.shape
    n_u, D = U.shape
    assert n == N and n_u == N, "module is only shape-consistent with N == 6"
    assert D % d1 == 0
    d2 = D // d1
    assert binary_parameters.shape == (S, D) and noise_g.shape == (S, D)

    # --- weight construction: tiny (N*D elements), hoisted out of the kernel ---
    w = _build_ensemble_weights(U, binary_parameters, noise_g)      # (N, D) f32

    # Strategy: block-diagonal single matmul (small D1/D2, only N of N^2 blocks
    # useful but everything tiny) vs a per-member grid axis (large, 128-aligned
    # D1/D2, where the block-diag weight would waste VMEM and MXU FLOPs).
    per_member_ok = (d1 % 128 == 0) and (d2 % 128 == 0)
    if strategy is None:
        bd_bytes = (N * d1) * (N * d2) * 2          # bf16 block-diag weight size
        strategy = "per_member" if (per_member_ok and bd_bytes > (2 << 20)) else "block_diag"
    assert strategy in ("block_diag", "per_member")
    if strategy == "per_member":
        assert per_member_ok, "per-member path needs D1 % 128 == 0 and D2 % 128 == 0"

    # --- batch tiling (zero-pad ragged batches instead of one giant tile) ---
    x2 = x.reshape(B, N * d1)            # free contiguous relayout
    tb = _choose_batch_tile(B)
    num_tiles = pl.cdiv(B, tb)
    Bp = num_tiles * tb
    if Bp != B:
        x2 = jnp.pad(x2, ((0, Bp - B), (0, 0)))

    if strategy == "block_diag":
        # Block-diagonal weight: W_bd[n*D1+d, m*D2+l] = w[n, d*D2+l] iff m == n.
        eye = jnp.eye(N, dtype=w.dtype)
        w_bd = jnp.einsum("nm,ndl->ndml", eye,
                          w.reshape(N, d1, d2)).reshape(N * d1, N * d2)
        w_bd = w_bd.astype(jnp.bfloat16)   # cast only the matmul operand; quantizer math stays f32
        # TODO(synk): on v5e the 192-wide output keeps a 64-lane masked tail store;
        # padding N*D2 to 256 would cost an extra HBM pass to slice back, so skipped.
        act2 = pl.pallas_call(
            _tile_matmul_kernel,
            out_shape=jax.ShapeDtypeStruct((Bp, N * d2), jnp.float32),
            grid=(num_tiles,),
            in_specs=[
                pl.BlockSpec((tb, N * d1), lambda i: (i, 0)),
                pl.BlockSpec((N * d1, N * d2), lambda i: (0, 0)),   # fetched once
            ],
            out_specs=pl.BlockSpec((tb, N * d2), lambda i: (i, 0)),
            compiler_params=pltpu.CompilerParams(
                dimension_semantics=("parallel",)),
        )(x2, w_bd)
    else:
        # Per-member path: grid (member, batch-tile); member outer so each member's
        # (D1, D2) weight block is fetched once and reused across batch tiles.
        w_sb = w.reshape(N * d1, d2).astype(jnp.bfloat16)
        act2 = pl.pallas_call(
            _tile_matmul_kernel,
            out_shape=jax.ShapeDtypeStruct((Bp, N * d2), jnp.float32),
            grid=(N, num_tiles),
            in_specs=[
                pl.BlockSpec((tb, d1), lambda m, i: (i, m)),
                pl.BlockSpec((d1, d2), lambda m, i: (m, 0)),
            ],
            out_specs=pl.BlockSpec((tb, d2), lambda m, i: (i, m)),
            compiler_params=pltpu.CompilerParams(
                dimension_semantics=("parallel", "parallel")),
        )(x2, w_sb)

    if Bp != B:
        act2 = act2[:B]

    # TODO(synk): torch's isnan print + exit() debug path is replaced by a
    # host-side assertion in __main__.
    return act2.reshape(B, N, d2)


def _reference_forward(x, U, bp, g):
    """Plain-jnp transcription of the torch forward (N=6, '6-3', bw=2)."""
    B, n, d1 = x.shape
    D = U.shape[1]
    d2 = D // d1
    beta = jnp.max(U)
    alpha = jnp.min(U)
    bsamples = jax.nn.sigmoid((g + bp) / TEMPERATURE)
    gates = jnp.minimum(1.0, jnp.maximum(0.0, bsamples * (ZP1 - ZP2) + ZP2))
    g0 = gates[:GATE_SPLIT]
    g1 = jnp.repeat(gates[GATE_SPLIT:], 2, axis=0)
    o0 = (g0 > 0.0).astype(jnp.float32)
    o1 = o0 * (g1 > 0.0).astype(jnp.float32)
    s0 = (beta - alpha) / RES_DENO_0
    v0 = s0 * jnp.round(U / s0)
    s1 = s0 / RES_DENO_1
    pm = 0.5 * (v0[0::2] + v0[1::2])
    mean_rep = jnp.repeat(pm, 2, axis=0)
    v1 = s1 * jnp.round((U - mean_rep) / s1)
    w = v0 * g0 * o0 + v1 * g1 * o1
    w3 = w.reshape(N, d1, d2)
    return jnp.einsum("bnd,ndl->bnl", x, w3)


if __name__ == "__main__":
    def make_inputs(key, B, d1, d2):
        D = d1 * d2
        k_x, k_u, k_bp, k_noise = jax.random.split(key, 4)
        x = jax.random.normal(k_x, (B, N, d1), jnp.float32)
        # Deterministic parameter init (kaiming_normal_: std = sqrt(2 / fan_in)).
        U = jax.random.normal(k_u, (N, D), jnp.float32) * jnp.sqrt(2.0 / D)
        bp = jax.random.normal(k_bp, (S, D), jnp.float32) * jnp.sqrt(2.0 / D)
        # Logistic noise g = log(u / (1 - u)), u ~ Uniform(0, 1): torch samples it
        # inside forward; here it is sampled deterministically and passed in.
        u01 = jax.random.uniform(k_noise, (S, D), jnp.float32,
                                 minval=1e-6, maxval=1.0 - 1e-6)
        g = jnp.log(u01 / (1.0 - u01))
        return x, U, bp, g

    def check(out, x, U, bp, g):
        assert not bool(jnp.any(jnp.isnan(out)))
        ref = _reference_forward(x, U, bp, g)
        err = float(jnp.max(jnp.abs(out - ref)))
        # bf16 MXU operands (f32 accumulate) vs the f32 reference.
        assert err < 1e-2, f"mismatch vs reference: {err}"

    # 1) Main config: block-diagonal path, two 64-row "parallel" batch tiles.
    x, U, bp, g = make_inputs(jax.random.PRNGKey(0), 128, 32, 32)
    act = jax.block_until_ready(dense_shared_res_bit_baens_fwd(x, U, bp, g))
    assert act.shape == (128, N, 32), act.shape
    check(act, x, U, bp, g)

    # 2) Ragged batch: exercises zero-padding to a tile multiple (no giant tile).
    xr, Ur, bpr, gr = make_inputs(jax.random.PRNGKey(1), 100, 32, 32)
    act_r = jax.block_until_ready(dense_shared_res_bit_baens_fwd(xr, Ur, bpr, gr))
    assert act_r.shape == (100, N, 32), act_r.shape
    check(act_r, xr, Ur, bpr, gr)

    # 3) 128-aligned D1/D2: per-member grid path (forced here; auto-selected once
    #    the block-diagonal weight would exceed ~2 MiB).
    xm, Um, bpm, gm = make_inputs(jax.random.PRNGKey(2), 16, 128, 128)
    act_m = jax.block_until_ready(
        dense_shared_res_bit_baens_fwd(xm, Um, bpm, gm, strategy="per_member"))
    assert act_m.shape == (16, N, 128), act_m.shape
    check(act_m, xm, Um, bpm, gm)

    print("KERNEL_OK")
</pallas_src>

<mosaic_0001>
module attributes {stable_mosaic.version = 11 : i64} {
  func.func @_tile_matmul_kernel(%arg0: i32, %arg1: memref<64x192xf32, #tpu.memory_space<vmem>>, %arg2: memref<192x192xbf16, #tpu.memory_space<vmem>>, %arg3: memref<64x192xf32, #tpu.memory_space<vmem>>) attributes {dimension_semantics = [#tpu.dimension_semantics<parallel>], iteration_bounds = array<i64: 2>, scalar_prefetch = 0 : i64, scratch_operands = 0 : i64, tpu.core_type = #tpu.core_type<tc>, window_params = [{transform_indices = @transform_0, window_bounds = array<i64: 64, 192>}, {pipeline_mode = #tpu.pipeline_mode<synchronous>, transform_indices = @transform_1, window_bounds = array<i64: 192, 192>}, {transform_indices = @transform_2, window_bounds = array<i64: 64, 192>}]} {
    %c0 = arith.constant 0 : index
    %c0_0 = arith.constant 0 : index
    %0 = vector.load %arg1[%c0, %c0_0] : memref<64x192xf32, #tpu.memory_space<vmem>>, vector<64x192xf32>
    %1 = arith.truncf %0 : vector<64x192xf32> to vector<64x192xbf16>
    %c0_1 = arith.constant 0 : index
    %c0_2 = arith.constant 0 : index
    %2 = vector.load %arg2[%c0_1, %c0_2] : memref<192x192xbf16, #tpu.memory_space<vmem>>, vector<192x192xbf16>
    %cst = arith.constant dense<0.000000e+00> : vector<64x192xf32>
    %3 = tpu.matmul %1, %2, %cst {dimension_numbers = #tpu.dot_dimension_numbers<[1], [0], [0], [1], [0, 0, 1, 1], [], []>} : vector<64x192xbf16>, vector<192x192xbf16>, vector<64x192xf32> -> vector<64x192xf32>
    %c0_3 = arith.constant 0 : index
    %c0_4 = arith.constant 0 : index
    %4 = vector.load %arg3[%c0_3, %c0_4] : memref<64x192xf32, #tpu.memory_space<vmem>>, vector<64x192xf32>
    tpu.vector_store %arg3[%c0_3, %c0_4], %3 {strides = array<i32>} : memref<64x192xf32, #tpu.memory_space<vmem>>, vector<64x192xf32>,
    return
  }
  func.func @transform_0(%arg0: i32) -> (i32, i32) {
    %c0_i32 = arith.constant 0 : i32
    %c0_i32_0 = arith.constant 0 : i32
    return %arg0, %c0_i32 : i32, i32
  }
  func.func @transform_1(%arg0: i32) -> (i32, i32) {
    %c0_i32 = arith.constant 0 : i32
    %c0_i32_0 = arith.constant 0 : i32
    %c0_i32_1 = arith.constant 0 : i32
    return %c0_i32, %c0_i32_0 : i32, i32
  }
  func.func @transform_2(%arg0: i32) -> (i32, i32) {
    %c0_i32 = arith.constant 0 : i32
    %c0_i32_0 = arith.constant 0 : i32
    return %arg0, %c0_i32 : i32, i32
  }
}

</mosaic_0001>

<bundles_post_ra>
// kernel: dense_shared_res_bit_baens_fwd.1
= control target key start
LH: loop header
LB: loop body
LE: loop exit
PB: predicated region body
PF: predicated region fallthrough
CT: control target
= control target key end

     0   :  { %s615_s9 = smov 0   ;;  %s759_s0 = inlined_call_operand.vmem [shape: f32[128,192], index: 0, kind: input, shape index: {}]   ;;  %s760_s1 = inlined_call_operand.vmem [shape: bf16[192,192], index: 1, kind: input, shape index: {}]   ;;  %s761_s2 = inlined_call_operand.vmem [shape: f32[128,192], index: 2, kind: output, shape index: {}]  }
   0x1 LB: > { %s481_s10 = sadd.s32 4294967295, %s598_s9   ;;  %p485_p0 = scmp.ge.s32.totalorder %s598_s9, 1  ;;  %s598_s9 = sphi %s615_s9, %s12_s9  }
   0x2   : > { %p114_p1 = scmp.lt.s32.totalorder %s598_s9, 3 }
   0x4   : > { %p115_p2 = pnand %p485_p0, %p114_p1 }
   0x5   : > { %v556_v0 = vld [vmem:[%s760_s1 + $0x4] ss:$8 sps:$4 sm:$0xff] (!%p115_p2)   ;;  %s486_s13 = sshll.u32 (!%p115_p2), %s481_s10, 3  ;;  %v558_v1 = vld [vmem:[%s760_s1] ss:$8 sps:$4 sm:$0xff] (!%p115_p2)   ;;  %vm321_vm0 = vcmask (!%p115_p2), 523264  }
   0x6   : > { %118 = sbr.rel (%p115_p2) target bundleno = 278 (0x116), region = 28  ;;  %334 = vmatprep.subr.bf16.mxu0 (!%p115_p2), %v556_v0  ;;  %524 = vmatprep.subr.bf16.mxu1 (!%p115_p2), %v556_v0  ;;  %v559_v2 = vld [vmem:[%s760_s1 + $0x14] ss:$8 sps:$4 sm:$0xff] (!%p115_p2)   ;;  %p139_p3 = scmp.lt.s32.totalorder (!%p115_p2), %s486_s13, 15  ;;  %v561_v3 = vld [vmem:[%s760_s1 + $0x10] ss:$8 sps:$4 sm:$0xff] (!%p115_p2)  }
   0x7   : > { %335 = vmatpush1.bf16.msra.mxu0 (!%p115_p2), %v558_v1  ;;  %536 = vmatpush1.bf16.msra.mxu1 (!%p115_p2), %v558_v1  ;;  %v562_v4 = vld [vmem:[%s760_s1 + $0x24] ss:$8 sps:$4 sm:$0xff] (!%p115_p2)   ;;  %v564_v5 = vld [vmem:[%s760_s1 + $0x20] ss:$8 sps:$4 sm:$0xff] (!%p115_p2)   ;;  %v565_v6 = vld [vmem:[%s760_s1 + $0x34] ss:$8 sps:$4 sm:$0xff] (!%p115_p2)  }
   0x8   : > { %336 = vmatprep.subr.bf16.mxu0 (!%p115_p2), %v559_v2  ;;  %525 = vmatprep.subr.bf16.mxu1 (!%p115_p2), %v559_v2  ;;  %v567_v7 = vld [vmem:[%s760_s1 + $0x30] ss:$8 sps:$4 sm:$0xff] (!%p115_p2)   ;;  %v568_v8 = vld [vmem:[%s760_s1 + $0x44] ss:$8 sps:$4 sm:$0xff] (!%p115_p2)   ;;  %v570_v9 = vld [vmem:[%s760_s1 + $0x40] ss:$8 sps:$4 sm:$0xff] (!%p115_p2)  }
   0x9   : > { %v571_v10 = vld [vmem:[%s760_s1 + $0x54] ss:$8 sps:$4 sm:$0xff] (!%p115_p2)   ;;  %v573_v17 = vld [vmem:[%s760_s1 + $0x50] ss:$8 sps:$4 sm:$0xff] (!%p115_p2)   ;;  %v574_v18 = vld [vmem:[%s760_s1 + $0x64] ss:$8 sps:$4 sm:$0xff] (!%p115_p2)  }
   0xa   : > { %v576_v19 = vld [vmem:[%s760_s1 + $0x60] ss:$8 sps:$4 sm:$0xff] (!%p115_p2)   ;;  %v577_v20 = vld [vmem:[%s760_s1 + $0x74] ss:$8 sps:$4 sm:$0xff] (!%p115_p2)   ;;  %v579_v21 = vld [vmem:[%s760_s1 + $0x70] ss:$8 sps:$4 sm:$0xff] (!%p115_p2)  }
   0xb   : > { %337 = vmatpush1.bf16.msra.mxu0 (!%p115_p2), %v561_v3  ;;  %537 = vmatpush1.bf16.msra.mxu1 (!%p115_p2), %v561_v3  ;;  %v580_v22 = vld [vmem:[%s760_s1 + $0x84] ss:$8 sps:$4 sm:$0xff] (!%p115_p2)   ;;  %v582_v23 = vld [vmem:[%s760_s1 + $0x80] ss:$8 sps:$4 sm:$0xff] (!%p115_p2)   ;;  %v583_v24 = vld [vmem:[%s760_s1 + $0x94] ss:$8 sps:$4 sm:$0xff] (!%p115_p2)  }
   0xc   : > { %338 = vmatprep.subr.bf16.mxu0 (!%p115_p2), %v562_v4  ;;  %526 = vmatprep.subr.bf16.mxu1 (!%p115_p2), %v562_v4  ;;  %v585_v25 = vld [vmem:[%s760_s1 + $0x90] ss:$8 sps:$4 sm:$0xff] (!%p115_p2)   ;;  %v586_v26 = vld [vmem:[%s760_s1 + $0xa4] ss:$8 sps:$4 sm:$0xff] (!%p115_p2)   ;;  %v588_v27 = vld [vmem:[%s760_s1 + $0xa0] ss:$8 sps:$4 sm:$0xff] (!%p115_p2)  }
   0xd   : > { %s763_s13 = smov (!%p139_p3, %s486_s13), 15  ;;  %v589_v28 = vld [vmem:[%s760_s1 + $0xb4] ss:$8 sps:$4 sm:$0xff]   ;;  %v591_v29 = vld [vmem:[%s760_s1 + $0xb0] ss:$8 sps:$4 sm:$0xff]  }
   0xe   : > { %s522_s26 = sshll.u32 %s763_s13, 4 }
   0xf   : > { %339 = vmatpush1.bf16.msra.mxu0 %v564_v5  ;;  %538 = vmatpush1.bf16.msra.mxu1 %v564_v5  ;;  %s658_s5 = scalar_lea.vmem %s759_s0, %s522_s26  ;;  %s730_s16 = scalar_lea.vmem %s761_s2, %s522_s26 }
  0x10   : > { %340 = vmatprep.subr.bf16.mxu0 %v565_v6  ;;  %527 = vmatprep.subr.bf16.mxu1 %v565_v6  ;;  %v154_v11 = vld [vmem:[%s658_s5 + $0x8] sm:$0xff]  ;;  %v156_v12 = vld [vmem:[%s658_s5 + $0x18] sm:$0xff]  ;;  %v153_v30 = vld [vmem:[%s658_s5] sm:$0xff] }
  0x11   : > { %v162_v13 = vld [vmem:[%s658_s5 + $0x48] sm:$0xff]  ;;  %v170_v14 = vpack.c.bf16 %v156_v12, %v154_v11  ;;  %v164_v15 = vld [vmem:[%s658_s5 + $0x58] sm:$0xff]  ;;  %v155_v31 = vld [vmem:[%s658_s5 + $0x10] sm:$0xff] }
  0x12   : > { %v174_v16 = vpack.c.bf16 %v164_v15, %v162_v13  ;;  %v161_v32 = vld [vmem:[%s658_s5 + $0x40] sm:$0xff]  ;;  %v163_v33 = vld [vmem:[%s658_s5 + $0x50] sm:$0xff]  ;;  %v158_v34 = vld [vmem:[%s658_s5 + $0x28] sm:$0xff]  ;;  %v169_v38 = vpack.c.bf16 %v155_v31, %v153_v30 }
  0x13   : > { %341 = vmatpush1.bf16.msra.mxu0 %v567_v7  ;;  %539 = vmatpush1.bf16.msra.mxu1 %v567_v7  ;;  %v160_v35 = vld [vmem:[%s658_s5 + $0x38] sm:$0xff]  ;;  %v166_v36 = vld [vmem:[%s658_s5 + $0x68] sm:$0xff]  ;;  %v173_v39 = vpack.c.bf16 %v163_v33, %v161_v32  ;;  %v157_v42 = vld [vmem:[%s658_s5 + $0x20] sm:$0xff] }
  0x14   : > { %342 = vmatprep.subr.bf16.mxu0 %v568_v8  ;;  %528 = vmatprep.subr.bf16.mxu1 %v568_v8  ;;  %v168_v37 = vld [vmem:[%s658_s5 + $0x78] sm:$0xff]  ;;  %v172_v40 = vpack.c.bf16 %v160_v35, %v158_v34  ;;  %v159_v43 = vld [vmem:[%s658_s5 + $0x30] sm:$0xff]  ;;  %v165_v44 = vld [vmem:[%s658_s5 + $0x60] sm:$0xff] }
  0x15   : > { %516 = vmatprep.mubr.msk.bf16.mxu0 %vm321_vm0, %v170_v14  ;;  %518 = vmatprep.mubr.msk.bf16.mxu1 %vm321_vm0, %v174_v16  ;;  %v176_v41 = vpack.c.bf16 %v168_v37, %v166_v36  ;;  %v167_v45 = vld [vmem:[%s658_s5 + $0x70] sm:$0xff]  ;;  %v171_v46 = vpack.c.bf16 %v159_v43, %v157_v42 }
  0x16   : > { %v175_v47 = vpack.c.bf16 %v167_v45, %v165_v44 }
  0x17   : > { %343 = vmatpush1.bf16.msra.mxu0 %v570_v9  ;;  %540 = vmatpush1.bf16.msra.mxu1 %v570_v9 }
  0x18   : > { %344 = vmatprep.subr.bf16.mxu0 %v571_v10  ;;  %529 = vmatprep.subr.bf16.mxu1 %v571_v10 }
  0x1b   : > { %345 = vmatpush1.bf16.msra.mxu0 %v573_v17  ;;  %541 = vmatpush1.bf16.msra.mxu1 %v573_v17 }
  0x1c   : > { %346 = vmatprep.subr.bf16.mxu0 %v574_v18  ;;  %530 = vmatprep.subr.bf16.mxu1 %v574_v18 }
  0x1f   : > { %347 = vmatpush1.bf16.msra.mxu0 %v576_v19  ;;  %542 = vmatpush1.bf16.msra.mxu1 %v576_v19 }
  0x20   : > { %348 = vmatprep.subr.bf16.mxu0 %v577_v20  ;;  %531 = vmatprep.subr.bf16.mxu1 %v577_v20 }
  0x23   : > { %349 = vmatpush1.bf16.msra.mxu0 %v579_v21  ;;  %543 = vmatpush1.bf16.msra.mxu1 %v579_v21 }
  0x24   : > { %350 = vmatprep.subr.bf16.mxu0 %v580_v22  ;;  %532 = vmatprep.subr.bf16.mxu1 %v580_v22 }
  0x27   : > { %351 = vmatpush1.bf16.msra.mxu0 %v582_v23  ;;  %544 = vmatpush1.bf16.msra.mxu1 %v582_v23 }
  0x28   : > { %352 = vmatprep.subr.bf16.mxu0 %v583_v24  ;;  %533 = vmatprep.subr.bf16.mxu1 %v583_v24 }
  0x2b   : > { %353 = vmatpush1.bf16.msra.mxu0 %v585_v25  ;;  %545 = vmatpush1.bf16.msra.mxu1 %v585_v25 }
  0x2c   : > { %354 = vmatprep.subr.bf16.mxu0 %v586_v26  ;;  %534 = vmatprep.subr.bf16.mxu1 %v586_v26 }
  0x2f   : > { %355 = vmatpush1.bf16.msra.mxu0 %v588_v27  ;;  %546 = vmatpush1.bf16.msra.mxu1 %v588_v27 }
  0x30   : > { %356 = vmatprep.subr.bf16.mxu0 %v589_v28  ;;  %535 = vmatprep.subr.bf16.mxu1 %v589_v28 }
  0x33   : > { %357 = vmatpush1.bf16.msra.mxu0 %v591_v29  ;;  %547 = vmatpush1.bf16.msra.mxu1 %v591_v29 }
  0x36   : > { %367 = vmatmul.mubr.bf16.vlgmr.msra.gmra.mrb[0].mxu0 %v169_v38  ;;  %387 = vmatmul.mubr.bf16.vlgmr.msra.gmra.mrb[0].mxu1 %v173_v39 }
  0x37   : > { %517 = vmatprep.mubr.msk.bf16.mxu0 %vm321_vm0, %v172_v40  ;;  %519 = vmatprep.mubr.msk.bf16.mxu1 %vm321_vm0, %v176_v41 }
  0x3e   : > { %377 = vmatmul.mubr.bf16.gmra.mrb[4].mxu0 %v171_v46  ;;  %397 = vmatmul.mubr.bf16.gmra.mrb[4].mxu1 %v175_v47 }
 0x109   : > { %v368_v48 = vpop.f32.mrb[0].mxu0  ;;  %v388_v49 = vpop.f32.mrb[0].mxu1 }
 0x10a   : > { %407 = vst [vmem:[%s730_s16] sm:$0xff] %v368_v48  ;;  %415 = vst [vmem:[%s730_s16 + $0x40] sm:$0xff] %v388_v49  ;;  %v370_v50 = vpop.f32.mrb[1].mxu0  ;;  %v390_v51 = vpop.f32.mrb[1].mxu1 }
 0x10b   : > { %408 = vst.msk [vmem:[%s730_s16 + $0x8] sm:$0xff] %vm321_vm0, %v370_v50  ;;  %416 = vst.msk [vmem:[%s730_s16 + $0x48] sm:$0xff] %vm321_vm0, %v390_v51  ;;  %v372_v52 = vpop.f32.mrb[2].mxu0  ;;  %v392_v53 = vpop.f32.mrb[2].mxu1 }
 0x10c   : > { %409 = vst [vmem:[%s730_s16 + $0x10] sm:$0xff] %v372_v52  ;;  %417 = vst [vmem:[%s730_s16 + $0x50] sm:$0xff] %v392_v53  ;;  %v374_v54 = vpop.f32.mrb[3].mxu0  ;;  %v394_v55 = vpop.f32.mrb[3].mxu1 }
 0x10d   : > { %410 = vst.msk [vmem:[%s730_s16 + $0x18] sm:$0xff] %vm321_vm0, %v374_v54  ;;  %418 = vst.msk [vmem:[%s730_s16 + $0x58] sm:$0xff] %vm321_vm0, %v394_v55 }
 0x111   : > { %v378_v56 = vpop.f32.mrb[4].mxu0  ;;  %v398_v57 = vpop.f32.mrb[4].mxu1 }
 0x112   : > { %411 = vst [vmem:[%s730_s16 + $0x20] sm:$0xff] %v378_v56  ;;  %419 = vst [vmem:[%s730_s16 + $0x60] sm:$0xff] %v398_v57  ;;  %v380_v58 = vpop.f32.mrb[5].mxu0  ;;  %v400_v59 = vpop.f32.mrb[5].mxu1 }
 0x113   : > { %412 = vst.msk [vmem:[%s730_s16 + $0x28] sm:$0xff] %vm321_vm0, %v380_v58  ;;  %420 = vst.msk [vmem:[%s730_s16 + $0x68] sm:$0xff] %vm321_vm0, %v400_v59  ;;  %v382_v60 = vpop.f32.mrb[6].mxu0  ;;  %v402_v61 = vpop.f32.mrb[6].mxu1 }
 0x114   : > { %413 = vst [vmem:[%s730_s16 + $0x30] sm:$0xff] %v382_v60  ;;  %421 = vst [vmem:[%s730_s16 + $0x70] sm:$0xff] %v402_v61  ;;  %v384_v62 = vpop.f32.mrb[7].mxu0  ;;  %v404_v63 = vpop.f32.mrb[7].mxu1 }
 0x115   : > { %414 = vst.msk [vmem:[%s730_s16 + $0x38] sm:$0xff] %vm321_vm0, %v384_v62  ;;  %422 = vst.msk [vmem:[%s730_s16 + $0x78] sm:$0xff] %vm321_vm0, %v404_v63 }
 0x116 PF: > { %s12_s9 = sadd.s32 1, %s598_s9  }
 0x117   : > { %p9_p4 = scmp.ge.s32.totalorder %s12_s9, 4  }
 0x119   :  { %11 = sbr.rel (!%p9_p4) target bundleno = 1 (0x1), region = 58 }

</bundles_post_ra>
